<compile_context>
chip_gen: v6e
topology: v6e:2x2x1
jax: 0.10.0
libtpu: 0.0.40
codegen_flags: <defaults>
</compile_context>

<pallas_src>
from functools import partial

import jax
import jax.numpy as jnp
from jax.experimental import pallas as pl
from jax.experimental.pallas import tpu as pltpu


N_OUT = 2          # projector output features (Linear(embed_dim, 2))
N_PAD = 128        # lane-dense padded output width


def mae_head_kernel(patches_ref, w_embed_ref, b_embed_ref,
                    w_proj_ref, b_proj_ref, out_ref, *, inv_d):
    # ---- stand-in frozen encoder: patch embed (bf16 MXU matmul, f32 accumulate) ----
    h = jnp.dot(patches_ref[...], w_embed_ref[...],
                preferred_element_type=jnp.float32)
    h = h + b_embed_ref[...]                    # (1, D_pad) f32; padded cols are 0

    # ---- fc_norm = nn.LayerNorm(embed_dim), eps=1e-5, fused single stats pass ----
    # gamma/beta are folded into the projector in the wrapper. inv_d = 1/real_D;
    # padded h columns are exactly 0 so the sums over D_pad lanes stay correct.
    mean = jnp.sum(h, axis=-1, keepdims=True) * inv_d
    mean_sq = jnp.sum(h * h, axis=-1, keepdims=True) * inv_d
    var = mean_sq - mean * mean                 # biased variance (PyTorch LayerNorm)
    inv = jax.lax.rsqrt(var + 1e-5)
    h_norm = (h - mean) * inv

    # ---- projector = Linear(embed_dim, 2): bf16 MXU matmul, 128 padded lanes ----
    y = jnp.dot(h_norm.astype(jnp.bfloat16), w_proj_ref[...],
                preferred_element_type=jnp.float32) + b_proj_ref[...]
    out_ref[...] = y.astype(out_ref.dtype)      # bf16 writeback


def _round_up(x, m):
    return ((x + m - 1) // m) * m


def _vmem_limit_bytes():
    """Generation-aware VMEM limit: physical capacity minus headroom."""
    try:
        cap = int(pltpu.get_tpu_info().vmem_capacity_bytes)
        return max(32 << 20, min(cap - (16 << 20), (cap * 7) // 8))
    except Exception:
        return 48 << 20    # safe on v7x (64 MiB/TC), conservative elsewhere


def _choose_tm(n_rows, in_dim, num_cores=2, bytes_per_elem=2,
               budget_bytes=8 << 20, min_grid_steps=4):
    """Rows per tile: big enough to amortize per-step overhead, small enough to
    keep >= min_grid_steps grid steps per core and fit the DMA/VMEM budget."""
    rows_pad8 = max(8, _round_up(n_rows, 8))
    # VMEM cap: two double-buffered bf16 patch tiles within budget_bytes
    tm_cap = (budget_bytes // (2 * in_dim * bytes_per_elem) // 8) * 8
    tm_cap = max(8, min(512, tm_cap))
    # grid-length target: >= min_grid_steps steps per TensorCore when rows permit
    tm_grid = _round_up(pl.cdiv(rows_pad8, min_grid_steps * num_cores), 8)
    tm = max(256, tm_grid)          # keep per-step (~0.35 us) overhead amortized
    tm = min(tm, tm_cap, 512)
    tm = min(tm, rows_pad8)         # small-problem case: a single tile
    return max(8, tm)


def mae_ds_forward(x, params, patch_size, tm=None):
    """x: (B, C, H, W) float32 (NCHW, like PyTorch).  Returns (B, N, 2) float32."""
    B, C, H, W = x.shape
    P = patch_size
    nh, nw = H // P, W // P
    N = nh * nw
    in_dim = C * P * P
    R = B * N

    # glue: NCHW -> (B*N, C*P*P) token-major patch matrix (see TODO above)
    patches = x.reshape(B, C, nh, P, nw, P)
    patches = patches.transpose(0, 2, 4, 1, 3, 5).reshape(R, in_dim)

    w_embed = params["w_embed"]                        # (in_dim, D)
    D = w_embed.shape[1]
    D_pad = max(128, _round_up(D, 128))                # lane-aligned embed width
    K_pad = max(128, _round_up(in_dim, 128))           # lane-aligned matmul K

    # bf16 patches, zero-padded K (dense MXU K passes, half the DMA bytes)
    patches_bf = patches.astype(jnp.bfloat16)
    if K_pad != in_dim:
        patches_bf = jnp.pad(patches_bf, ((0, 0), (0, K_pad - in_dim)))

    # embed weights/bias zero-padded to (K_pad, D_pad); padded h columns are 0
    w_embed_bf = jnp.zeros((K_pad, D_pad), jnp.bfloat16).at[:in_dim, :D].set(
        w_embed.astype(jnp.bfloat16))
    b_embed = jnp.zeros((1, D_pad), jnp.float32).at[:, :D].set(params["b_embed"])

    # fold LayerNorm affine into the projector (exact):
    #   ((h-m)*inv*gamma + beta) @ W + b = ((h-m)*inv) @ (gamma^T * W) + (beta @ W + b)
    w_proj_f = params["w_proj"] * params["gamma"].reshape(D, 1)        # (D, 2)
    b_proj_f = params["beta"] @ params["w_proj"] + params["b_proj"]    # (1, 2)

    # bf16 projector weights padded to 128 lanes / D_pad rows; bias stays f32
    w_proj_pad = jnp.zeros((D_pad, N_PAD), jnp.bfloat16).at[:D, :N_OUT].set(
        w_proj_f.astype(jnp.bfloat16))
    b_proj_pad = jnp.zeros((1, N_PAD), jnp.float32).at[:, :N_OUT].set(b_proj_f)

    # row tile + padding so the grid divides evenly (padded rows sliced off below)
    if tm is None:
        tm = _choose_tm(R, K_pad)
    R_pad = pl.cdiv(R, tm) * tm
    if R_pad != R:
        patches_bf = jnp.pad(patches_bf, ((0, R_pad - R), (0, 0)))

    kernel = partial(mae_head_kernel, inv_d=1.0 / D)

    def call(buffered):
        def resident(shape):
            if buffered:
                # constant-index weights: single-buffered, saves VMEM
                return pl.BlockSpec(shape, lambda i: (0,) * len(shape),
                                    pipeline_mode=pl.Buffered(1))
            return pl.BlockSpec(shape, lambda i: (0,) * len(shape))

        return pl.pallas_call(
            kernel,
            out_shape=jax.ShapeDtypeStruct((R_pad, N_PAD), jnp.bfloat16),
            grid=(R_pad // tm,),
            in_specs=[
                pl.BlockSpec((tm, K_pad), lambda i: (i, 0)),   # patches: tiled rows
                resident(w_embed_bf.shape),                    # weights VMEM-resident
                resident(b_embed.shape),
                resident(w_proj_pad.shape),
                resident(b_proj_pad.shape),
            ],
            out_specs=pl.BlockSpec((tm, N_PAD), lambda i: (i, 0)),
            compiler_params=pltpu.CompilerParams(
                dimension_semantics=("parallel",),             # row tiles independent
                vmem_limit_bytes=_vmem_limit_bytes()),
        )(patches_bf, w_embed_bf, b_embed, w_proj_pad, b_proj_pad)

    try:
        out = call(buffered=True)
    except Exception:
        # pipeline_mode=Buffered(1) unsupported on this jax/libtpu: default buffering
        out = call(buffered=False)

    return out[:R, :N_OUT].astype(jnp.float32).reshape(B, N, N_OUT)


def make_params(key, in_dim, embed_dim):
    k0, k1, k2, k3 = jax.random.split(key, 4)
    return {
        # frozen stand-in encoder patch embed
        "w_embed": (jax.random.normal(k0, (in_dim, embed_dim), jnp.float32)
                    * (1.0 / jnp.sqrt(in_dim))),
        "b_embed": jax.random.normal(k1, (1, embed_dim), jnp.float32) * 0.02,
        # fc_norm (LayerNorm) params: PyTorch init gamma=1, beta=0
        "gamma": jnp.ones((1, embed_dim), jnp.float32),
        "beta": jnp.zeros((1, embed_dim), jnp.float32),
        # projector Linear(embed_dim, 2)
        "w_proj": (jax.random.normal(k2, (embed_dim, N_OUT), jnp.float32)
                   * (1.0 / jnp.sqrt(embed_dim))),
        "b_proj": jax.random.normal(k3, (1, N_OUT), jnp.float32) * 0.02,
    }


if __name__ == "__main__":
    key = jax.random.PRNGKey(0)
    kx, kp = jax.random.split(key)

    # small shapes consistent with the module's forward
    B, C, H, W = 2, 4, 16, 16
    patch_size = 8
    embed_dim = 32
    in_dim = C * patch_size * patch_size      # 256

    x = jax.random.normal(kx, (B, C, H, W), jnp.float32)
    params = make_params(kp, in_dim, embed_dim)

    out = mae_ds_forward(x, params, patch_size)
    out = jax.block_until_ready(out)

    # pure-JAX reference with the same bf16 quantization of both matmuls
    nh, nw = H // patch_size, W // patch_size
    patches = x.reshape(B, C, nh, patch_size, nw, patch_size)
    patches = patches.transpose(0, 2, 4, 1, 3, 5).reshape(B * nh * nw, in_dim)
    h = jnp.dot(patches.astype(jnp.bfloat16),
                params["w_embed"].astype(jnp.bfloat16),
                preferred_element_type=jnp.float32) + params["b_embed"]
    mu = h.mean(-1, keepdims=True)
    var = ((h - mu) ** 2).mean(-1, keepdims=True)
    hn = (h - mu) / jnp.sqrt(var + 1e-5) * params["gamma"] + params["beta"]
    ref = (jnp.dot(hn.astype(jnp.bfloat16),
                   params["w_proj"].astype(jnp.bfloat16),
                   preferred_element_type=jnp.float32)
           + params["b_proj"]).reshape(B, nh * nw, N_OUT)

    assert out.shape == (B, nh * nw, N_OUT), out.shape
    assert jnp.allclose(out, ref, atol=2e-2, rtol=2e-2), \
        float(jnp.max(jnp.abs(out - ref)))

    print("KERNEL_OK")
</pallas_src>

<mosaic_0001>
module attributes {stable_mosaic.version = 11 : i64} {
  func.func @mae_head_kernel(%arg0: i32, %arg1: memref<8x256xbf16, #tpu.memory_space<vmem>>, %arg2: memref<256x128xbf16, #tpu.memory_space<vmem>>, %arg3: memref<1x128xf32, #tpu.memory_space<vmem>>, %arg4: memref<128x128xbf16, #tpu.memory_space<vmem>>, %arg5: memref<1x128xf32, #tpu.memory_space<vmem>>, %arg6: memref<8x128xbf16, #tpu.memory_space<vmem>>) attributes {dimension_semantics = [#tpu.dimension_semantics<parallel>], iteration_bounds = array<i64: 1>, scalar_prefetch = 0 : i64, scratch_operands = 0 : i64, tpu.core_type = #tpu.core_type<tc>, window_params = [{transform_indices = @transform_0, window_bounds = array<i64: 8, 256>}, {pipeline_mode = #tpu.pipeline_mode<synchronous>, transform_indices = @transform_1, window_bounds = array<i64: 256, 128>}, {pipeline_mode = #tpu.pipeline_mode<synchronous>, transform_indices = @transform_2, window_bounds = array<i64: 1, 128>}, {pipeline_mode = #tpu.pipeline_mode<synchronous>, transform_indices = @transform_3, window_bounds = array<i64: 128, 128>}, {pipeline_mode = #tpu.pipeline_mode<synchronous>, transform_indices = @transform_4, window_bounds = array<i64: 1, 128>}, {transform_indices = @transform_5, window_bounds = array<i64: 8, 128>}]} {
    %c0 = arith.constant 0 : index
    %c0_0 = arith.constant 0 : index
    %0 = vector.load %arg1[%c0, %c0_0] : memref<8x256xbf16, #tpu.memory_space<vmem>>, vector<8x256xbf16>
    %c0_1 = arith.constant 0 : index
    %c0_2 = arith.constant 0 : index
    %1 = vector.load %arg2[%c0_1, %c0_2] : memref<256x128xbf16, #tpu.memory_space<vmem>>, vector<256x128xbf16>
    %cst = arith.constant dense<0.000000e+00> : vector<8x128xf32>
    %2 = tpu.matmul %0, %1, %cst {dimension_numbers = #tpu.dot_dimension_numbers<[1], [0], [0], [1], [0, 0, 1, 1], [], []>} : vector<8x256xbf16>, vector<256x128xbf16>, vector<8x128xf32> -> vector<8x128xf32>
    %c0_3 = arith.constant 0 : index
    %c0_4 = arith.constant 0 : index
    %3 = vector.load %arg3[%c0_3, %c0_4] : memref<1x128xf32, #tpu.memory_space<vmem>>, vector<1x128xf32>
    %4 = vector.broadcast %3 : vector<1x128xf32> to vector<8x128xf32>
    %5 = arith.addf %2, %4 : vector<8x128xf32>
    %cst_5 = arith.constant dense<0.000000e+00> : vector<8xf32>
    %6 = vector.multi_reduction <add>, %5, %cst_5 [1] : vector<8x128xf32> to vector<8xf32>
    %7 = vector.shape_cast %6 : vector<8xf32> to vector<8x1xf32>
    %cst_6 = arith.constant 3.125000e-02 : f32
    %8 = vector.broadcast %cst_6 : f32 to vector<8x1xf32>
    %9 = arith.mulf %7, %8 : vector<8x1xf32>
    %10 = arith.mulf %5, %5 : vector<8x128xf32>
    %cst_7 = arith.constant dense<0.000000e+00> : vector<8xf32>
    %11 = vector.multi_reduction <add>, %10, %cst_7 [1] : vector<8x128xf32> to vector<8xf32>
    %12 = vector.shape_cast %11 : vector<8xf32> to vector<8x1xf32>
    %cst_8 = arith.constant 3.125000e-02 : f32
    %13 = vector.broadcast %cst_8 : f32 to vector<8x1xf32>
    %14 = arith.mulf %12, %13 : vector<8x1xf32>
    %15 = arith.mulf %9, %9 : vector<8x1xf32>
    %16 = arith.subf %14, %15 : vector<8x1xf32>
    %cst_9 = arith.constant 9.99999974E-6 : f32
    %17 = vector.broadcast %cst_9 : f32 to vector<8x1xf32>
    %18 = arith.addf %16, %17 : vector<8x1xf32>
    %19 = math.rsqrt %18 : vector<8x1xf32>
    %20 = vector.broadcast %9 : vector<8x1xf32> to vector<8x128xf32>
    %21 = arith.subf %5, %20 : vector<8x128xf32>
    %22 = vector.broadcast %19 : vector<8x1xf32> to vector<8x128xf32>
    %23 = arith.mulf %21, %22 : vector<8x128xf32>
    %24 = arith.truncf %23 : vector<8x128xf32> to vector<8x128xbf16>
    %c0_10 = arith.constant 0 : index
    %c0_11 = arith.constant 0 : index
    %25 = vector.load %arg4[%c0_10, %c0_11] : memref<128x128xbf16, #tpu.memory_space<vmem>>, vector<128x128xbf16>
    %cst_12 = arith.constant dense<0.000000e+00> : vector<8x128xf32>
    %26 = tpu.matmul %24, %25, %cst_12 {dimension_numbers = #tpu.dot_dimension_numbers<[1], [0], [0], [1], [0, 0, 1, 1], [], []>} : vector<8x128xbf16>, vector<128x128xbf16>, vector<8x128xf32> -> vector<8x128xf32>
    %c0_13 = arith.constant 0 : index
    %c0_14 = arith.constant 0 : index
    %27 = vector.load %arg5[%c0_13, %c0_14] : memref<1x128xf32, #tpu.memory_space<vmem>>, vector<1x128xf32>
    %28 = vector.broadcast %27 : vector<1x128xf32> to vector<8x128xf32>
    %29 = arith.addf %26, %28 : vector<8x128xf32>
    %30 = arith.truncf %29 : vector<8x128xf32> to vector<8x128xbf16>
    %c0_15 = arith.constant 0 : index
    %c0_16 = arith.constant 0 : index
    %31 = vector.load %arg6[%c0_15, %c0_16] : memref<8x128xbf16, #tpu.memory_space<vmem>>, vector<8x128xbf16>
    tpu.vector_store %arg6[%c0_15, %c0_16], %30 {strides = array<i32>} : memref<8x128xbf16, #tpu.memory_space<vmem>>, vector<8x128xbf16>,
    return
  }
  func.func @transform_0(%arg0: i32) -> (i32, i32) {
    %c0_i32 = arith.constant 0 : i32
    %c0_i32_0 = arith.constant 0 : i32
    return %arg0, %c0_i32 : i32, i32
  }
  func.func @transform_1(%arg0: i32) -> (i32, i32) {
    %c0_i32 = arith.constant 0 : i32
    %c0_i32_0 = arith.constant 0 : i32
    %c0_i32_1 = arith.constant 0 : i32
    return %c0_i32, %c0_i32_0 : i32, i32
  }
  func.func @transform_2(%arg0: i32) -> (i32, i32) {
    %c0_i32 = arith.constant 0 : i32
    %c0_i32_0 = arith.constant 0 : i32
    %c0_i32_1 = arith.constant 0 : i32
    return %c0_i32, %c0_i32_0 : i32, i32
  }
  func.func @transform_3(%arg0: i32) -> (i32, i32) {
    %c0_i32 = arith.constant 0 : i32
    %c0_i32_0 = arith.constant 0 : i32
    %c0_i32_1 = arith.constant 0 : i32
    return %c0_i32, %c0_i32_0 : i32, i32
  }
  func.func @transform_4(%arg0: i32) -> (i32, i32) {
    %c0_i32 = arith.constant 0 : i32
    %c0_i32_0 = arith.constant 0 : i32
    %c0_i32_1 = arith.constant 0 : i32
    return %c0_i32, %c0_i32_0 : i32, i32
  }
  func.func @transform_5(%arg0: i32) -> (i32, i32) {
    %c0_i32 = arith.constant 0 : i32
    %c0_i32_0 = arith.constant 0 : i32
    return %arg0, %c0_i32 : i32, i32
  }
}

module attributes {stable_mosaic.version = 11 : i64} {
  func.func @mae_head_kernel(%arg0: i32, %arg1: memref<8x256xbf16, #tpu.memory_space<vmem>>, %arg2: memref<256x128xbf16, #tpu.memory_space<vmem>>, %arg3: memref<1x128xf32, #tpu.memory_space<vmem>>, %arg4: memref<128x128xbf16, #tpu.memory_space<vmem>>, %arg5: memref<1x128xf32, #tpu.memory_space<vmem>>, %arg6: memref<8x128xbf16, #tpu.memory_space<vmem>>) attributes {dimension_semantics = [#tpu.dimension_semantics<parallel>], iteration_bounds = array<i64: 1>, scalar_prefetch = 0 : i64, scratch_operands = 0 : i64, tpu.core_type = #tpu.core_type<tc>, window_params = [{transform_indices = @transform_0, window_bounds = array<i64: 8, 256>}, {pipeline_mode = #tpu.pipeline_mode<synchronous>, transform_indices = @transform_1, window_bounds = array<i64: 256, 128>}, {pipeline_mode = #tpu.pipeline_mode<synchronous>, transform_indices = @transform_2, window_bounds = array<i64: 1, 128>}, {pipeline_mode = #tpu.pipeline_mode<synchronous>, transform_indices = @transform_3, window_bounds = array<i64: 128, 128>}, {pipeline_mode = #tpu.pipeline_mode<synchronous>, transform_indices = @transform_4, window_bounds = array<i64: 1, 128>}, {transform_indices = @transform_5, window_bounds = array<i64: 8, 128>}]} {
    %c0 = arith.constant 0 : index
    %c0_0 = arith.constant 0 : index
    %0 = vector.load %arg1[%c0, %c0_0] : memref<8x256xbf16, #tpu.memory_space<vmem>>, vector<8x256xbf16>
    %c0_1 = arith.constant 0 : index
    %c0_2 = arith.constant 0 : index
    %1 = vector.load %arg2[%c0_1, %c0_2] : memref<256x128xbf16, #tpu.memory_space<vmem>>, vector<256x128xbf16>
    %cst = arith.constant dense<0.000000e+00> : vector<8x128xf32>
    %2 = tpu.matmul %0, %1, %cst {dimension_numbers = #tpu.dot_dimension_numbers<[1], [0], [0], [1], [0, 0, 1, 1], [], []>} : vector<8x256xbf16>, vector<256x128xbf16>, vector<8x128xf32> -> vector<8x128xf32>
    %c0_3 = arith.constant 0 : index
    %c0_4 = arith.constant 0 : index
    %3 = vector.load %arg3[%c0_3, %c0_4] : memref<1x128xf32, #tpu.memory_space<vmem>>, vector<1x128xf32>
    %4 = vector.broadcast %3 : vector<1x128xf32> to vector<8x128xf32>
    %5 = arith.addf %2, %4 : vector<8x128xf32>
    %cst_5 = arith.constant dense<0.000000e+00> : vector<8xf32>
    %6 = vector.multi_reduction <add>, %5, %cst_5 [1] : vector<8x128xf32> to vector<8xf32>
    %7 = vector.shape_cast %6 : vector<8xf32> to vector<8x1xf32>
    %cst_6 = arith.constant 3.125000e-02 : f32
    %8 = vector.broadcast %cst_6 : f32 to vector<8x1xf32>
    %9 = arith.mulf %7, %8 : vector<8x1xf32>
    %10 = arith.mulf %5, %5 : vector<8x128xf32>
    %cst_7 = arith.constant dense<0.000000e+00> : vector<8xf32>
    %11 = vector.multi_reduction <add>, %10, %cst_7 [1] : vector<8x128xf32> to vector<8xf32>
    %12 = vector.shape_cast %11 : vector<8xf32> to vector<8x1xf32>
    %cst_8 = arith.constant 3.125000e-02 : f32
    %13 = vector.broadcast %cst_8 : f32 to vector<8x1xf32>
    %14 = arith.mulf %12, %13 : vector<8x1xf32>
    %15 = arith.mulf %9, %9 : vector<8x1xf32>
    %16 = arith.subf %14, %15 : vector<8x1xf32>
    %cst_9 = arith.constant 9.99999974E-6 : f32
    %17 = vector.broadcast %cst_9 : f32 to vector<8x1xf32>
    %18 = arith.addf %16, %17 : vector<8x1xf32>
    %19 = math.rsqrt %18 : vector<8x1xf32>
    %20 = vector.broadcast %9 : vector<8x1xf32> to vector<8x128xf32>
    %21 = arith.subf %5, %20 : vector<8x128xf32>
    %22 = vector.broadcast %19 : vector<8x1xf32> to vector<8x128xf32>
    %23 = arith.mulf %21, %22 : vector<8x128xf32>
    %24 = arith.truncf %23 : vector<8x128xf32> to vector<8x128xbf16>
    %c0_10 = arith.constant 0 : index
    %c0_11 = arith.constant 0 : index
    %25 = vector.load %arg4[%c0_10, %c0_11] : memref<128x128xbf16, #tpu.memory_space<vmem>>, vector<128x128xbf16>
    %cst_12 = arith.constant dense<0.000000e+00> : vector<8x128xf32>
    %26 = tpu.matmul %24, %25, %cst_12 {dimension_numbers = #tpu.dot_dimension_numbers<[1], [0], [0], [1], [0, 0, 1, 1], [], []>} : vector<8x128xbf16>, vector<128x128xbf16>, vector<8x128xf32> -> vector<8x128xf32>
    %c0_13 = arith.constant 0 : index
    %c0_14 = arith.constant 0 : index
    %27 = vector.load %arg5[%c0_13, %c0_14] : memref<1x128xf32, #tpu.memory_space<vmem>>, vector<1x128xf32>
    %28 = vector.broadcast %27 : vector<1x128xf32> to vector<8x128xf32>
    %29 = arith.addf %26, %28 : vector<8x128xf32>
    %30 = arith.truncf %29 : vector<8x128xf32> to vector<8x128xbf16>
    %c0_15 = arith.constant 0 : index
    %c0_16 = arith.constant 0 : index
    %31 = vector.load %arg6[%c0_15, %c0_16] : memref<8x128xbf16, #tpu.memory_space<vmem>>, vector<8x128xbf16>
    tpu.vector_store %arg6[%c0_15, %c0_16], %30 {strides = array<i32>} : memref<8x128xbf16, #tpu.memory_space<vmem>>, vector<8x128xbf16>,
    return
  }
  func.func @transform_0(%arg0: i32) -> (i32, i32) {
    %c0_i32 = arith.constant 0 : i32
    %c0_i32_0 = arith.constant 0 : i32
    return %arg0, %c0_i32 : i32, i32
  }
  func.func @transform_1(%arg0: i32) -> (i32, i32) {
    %c0_i32 = arith.constant 0 : i32
    %c0_i32_0 = arith.constant 0 : i32
    %c0_i32_1 = arith.constant 0 : i32
    return %c0_i32, %c0_i32_0 : i32, i32
  }
  func.func @transform_2(%arg0: i32) -> (i32, i32) {
    %c0_i32 = arith.constant 0 : i32
    %c0_i32_0 = arith.constant 0 : i32
    %c0_i32_1 = arith.constant 0 : i32
    return %c0_i32, %c0_i32_0 : i32, i32
  }
  func.func @transform_3(%arg0: i32) -> (i32, i32) {
    %c0_i32 = arith.constant 0 : i32
    %c0_i32_0 = arith.constant 0 : i32
    %c0_i32_1 = arith.constant 0 : i32
    return %c0_i32, %c0_i32_0 : i32, i32
  }
  func.func @transform_4(%arg0: i32) -> (i32, i32) {
    %c0_i32 = arith.constant 0 : i32
    %c0_i32_0 = arith.constant 0 : i32
    %c0_i32_1 = arith.constant 0 : i32
    return %c0_i32, %c0_i32_0 : i32, i32
  }
  func.func @transform_5(%arg0: i32) -> (i32, i32) {
    %c0_i32 = arith.constant 0 : i32
    %c0_i32_0 = arith.constant 0 : i32
    return %arg0, %c0_i32 : i32, i32
  }
}

</mosaic_0001>

<bundles_post_ra>
// kernel: tpu_custom_call.1
= control target key start
LH: loop header
LB: loop body
LE: loop exit
PB: predicated region body
PF: predicated region fallthrough
CT: control target
= control target key end

     0   :  { %10 = vsyncpa [#allocation3], 0  ;;  %s644_s0 = inlined_call_operand.hbm [shape: bf16[8,256], index: 0, kind: input, shape index: {}]   ;;  %s645_s1 = inlined_call_operand.hbm [shape: bf16[256,128], index: 1, kind: input, shape index: {}]   ;;  %s646_s2 = inlined_call_operand.vmem [shape: f32[1,128], index: 2, kind: input, shape index: {}]   ;;  %s647_s3 = inlined_call_operand.hbm [shape: bf16[128,128], index: 3, kind: input, shape index: {}]   ;;  %s648_s4 = inlined_call_operand.vmem [shape: f32[1,128], index: 4, kind: input, shape index: {}]   ;;  %s649_s5 = inlined_call_operand.hbm [shape: bf16[8,128], index: 5, kind: output, shape index: {}]  }
   0x1   :  { %11 = vsyncpa [#allocation6], 0 }
   0x2   :  { %12 = vsyncpa [#allocation4], 0  ;;  %s588_s18 = smov [#allocation5]  }
   0x3   :  { %s28_s19 = sshll.u32 %s588_s18, 4  ;;  %s29_s19 = int_to_ptr.vmem [resolvable:$true] %s28_s19 }
   0x4   :  { %s510_s20 = scalar_lea.vmem %s29_s19, 2048  ;;  %p515_p1 = scmp.lt.s32.totalorder %s29_s19, %s29_s19 }
   0x5   :  { %p511_p0 = scmp.ne.s32.totalorder %s29_s19, %s510_s20  ;;  %p516_p2 = scmp.lt.s32.totalorder %s510_s20, %s510_s20 }
   0x7   :  { %p517_p3 = por %p516_p2, %p515_p1 }
   0x9   :  { %p518_p4 = pnand %p517_p3, %p511_p0 }
   0xb   :  { %521 = shalt.err (!%p518_p4)
}
   0xc   :  { %s589_s21 = smov 64   ;;  %s590_s22 = smov 4  }
   0xd   :  { %34 = dma.hbm_to_vmem [thread:$0]  %s645_s1, 2048, %s29_s19, [#allocation6], %s589_s21, %s589_s21, %s590_s22  }
   0xe   :  { %s591_s25 = smov [#allocation2]   ;;  %s592_s27 = smov [#allocation7]  }
   0xf   :  { %s19_s26 = sshll.u32 %s591_s25, 4  ;;  %s42_s28 = sshll.u32 %s592_s27, 4  ;;  %s20_s26 = int_to_ptr.vmem [resolvable:$true] %s19_s26  ;;  %s43_s28 = int_to_ptr.vmem [resolvable:$true] %s42_s28 }
  0x10   :  { %s530_s29 = scalar_lea.vmem %s20_s26, 128  ;;  %p535_p6 = scmp.lt.s32.totalorder %s20_s26, %s20_s26 }
  0x11   :  { %p531_p5 = scmp.ne.s32.totalorder %s20_s26, %s530_s29  ;;  %p536_p7 = scmp.lt.s32.totalorder %s530_s29, %s530_s29 }
  0x13   :  { %p537_p8 = por %p536_p7, %p535_p6 }
  0x15   :  { %p538_p9 = pnand %p537_p8, %p531_p5 }
  0x17   :  { %541 = shalt.err (!%p538_p9)
}
  0x18   :  { %22 = dma.hbm_to_vmem [thread:$0]  %s644_s0, 128, %s20_s26, [#allocation3]  }
  0x19   :  { %s550_s7 = scalar_lea.vmem %s43_s28, 1024  ;;  %p555_p11 = scmp.lt.s32.totalorder %s43_s28, %s43_s28 }
  0x1a   :  { %p551_p10 = scmp.ne.s32.totalorder %s43_s28, %s550_s7  ;;  %p556_p12 = scmp.lt.s32.totalorder %s550_s7, %s550_s7 }
  0x1c   :  { %p557_p13 = por %p556_p12, %p555_p11 }
  0x1e   :  { %p558_p0 = pnand %p557_p13, %p551_p10 }
  0x20   :  { %561 = shalt.err (!%p558_p0)
}
  0x21   :  { %48 = dma.hbm_to_vmem [thread:$0]  %s647_s3, 1024, %s43_s28, [#allocation6], %s589_s21, %s589_s21, %s590_s22  }
  0x22   :  { %582 = dma.done.wait [#allocation3], 128  }
  0x23   :  { %583 = vsyncadd [#allocation3], 4294967168 }
  0x24   :  { %584 = dma.done.wait [#allocation6], 3072  }
  0x25   :  { %585 = vsyncadd [#allocation6], 4294964224  ;;  %v474_v0 = vld [vmem:[#allocation5 + $0x78] sm:$0xff]   ;;  %v476_v2 = vld [vmem:[#allocation5 + $0x70] sm:$0xff]   ;;  %v593_v20 = vmov 0.0   ;;  %vm594_vm0 = vmmov 0  }
  0x26   :  { %v475_v1 = vld [vmem:[#allocation5 + $0x38] sm:$0xff]   ;;  %415 = vmatprep.subr.bf16.mxu0 %v474_v0  ;;  %v477_v3 = vld [vmem:[#allocation5 + $0x30] sm:$0xff]   ;;  %v478_v4 = vld [vmem:[#allocation5 + $0x68] sm:$0xff]   ;;  %446 = vmatprep.subr.bf16.mxu1 %v593_v20  ;;  %s595_s10 = smov [#allocation8]  }
  0x27   :  { %416 = vmatpush3.bf16.msra.mxu0 %v475_v1  ;;  %v479_v5 = vld [vmem:[#allocation5 + $0x28] sm:$0xff]   ;;  %v480_v6 = vld [vmem:[#allocation5 + $0x60] sm:$0xff]   ;;  %v482_v8 = vld [vmem:[#allocation5 + $0x58] sm:$0xff]   ;;  %462 = vmatprep.mubr.msk.bf16.mxu1 %vm594_vm0, %v593_v20  ;;  %s377_s11 = sshll.u32 %s595_s10, 4  ;;  %s378_s11 = int_to_ptr.vmem [resolvable:$true] %s377_s11 }
  0x28   :  { %417 = vmatprep.subr.bf16.mxu0 %v476_v2  ;;  %v481_v7 = vld [vmem:[#allocation5 + $0x20] sm:$0xff]   ;;  %v483_v9 = vld [vmem:[#allocation5 + $0x18] sm:$0xff]   ;;  %v484_v10 = vld [vmem:[#allocation5 + $0x50] sm:$0xff]   ;;  %s562_s12 = scalar_lea.vmem %s378_s11, 64  ;;  %p567_p2 = scmp.lt.s32.totalorder %s378_s11, %s378_s11 }
  0x29   :  { %v61_v11 = vld [vmem:[#allocation2] sm:$0xff]  ;;  %v485_v12 = vld [vmem:[#allocation5 + $0x10] sm:$0xff]   ;;  %v486_v14 = vld [vmem:[#allocation5 + $0x48] sm:$0xff]   ;;  %p563_p1 = scmp.ne.s32.totalorder %s378_s11, %s562_s12  ;;  %p568_p3 = scmp.lt.s32.totalorder %s562_s12, %s562_s12 }
  0x2a   :  { %v389_v13 = vcombine.high %v61_v11, %v61_v11  ;;  %v487_v15 = vld [vmem:[#allocation5 + $0x8] sm:$0xff]   ;;  %v488_v16 = vld [vmem:[#allocation5 + $0x40] sm:$0xff]   ;;  %v388_v18 = vcombine.low %v61_v11, %v61_v11  ;;  %v492_v19 = vld [vmem:[#allocation7 + $0x38] sm:$0xff]  }
  0x2b   :  { %418 = vmatpush3.bf16.msra.mxu0 %v477_v3  ;;  %v489_v17 = vld [vmem:[#allocation5] sm:$0xff]   ;;  %447 = vmatpush3.bf16.msra.mxu1 %v492_v19  ;;  %v387_v22 = vld [vmem:[%s646_s2] ss:$0 sm:$0xff]  ;;  %v493_v29 = vld [vmem:[#allocation7 + $0x30] sm:$0xff]   ;;  %p569_p4 = por %p568_p3, %p567_p2 }
  0x2c   :  { %419 = vmatprep.subr.bf16.mxu0 %v478_v4  ;;  %236 = vmatprep.mubr.bf16.mxu0 %v389_v13  ;;  %v494_v30 = vld [vmem:[#allocation7 + $0x28] sm:$0xff]   ;;  %v495_v31 = vld [vmem:[#allocation7 + $0x20] sm:$0xff]   ;;  %v496_v32 = vld [vmem:[#allocation7 + $0x18] sm:$0xff]  }
  0x2d   :  { %448 = vmatprep.subr.bf16.mxu1 %v593_v20  ;;  %v497_v33 = vld [vmem:[#allocation7 + $0x10] sm:$0xff]   ;;  %v498_v34 = vld [vmem:[#allocation7 + $0x8] sm:$0xff]   ;;  %v499_v35 = vld [vmem:[#allocation7] sm:$0xff]   ;;  %p570_p5 = pnand %p569_p4, %p563_p1 }
  0x2e   :  { %v406_v47 = vld [vmem:[%s648_s4] ss:$0 sm:$0xff] }
  0x2f   :  { %420 = vmatpush3.bf16.msra.mxu0 %v479_v5  ;;  %449 = vmatpush3.bf16.msra.mxu1 %v493_v29 }
  0x30   :  { %421 = vmatprep.subr.bf16.mxu0 %v480_v6  ;;  %450 = vmatprep.subr.bf16.mxu1 %v593_v20 }
  0x33   :  { %422 = vmatpush3.bf16.msra.mxu0 %v481_v7  ;;  %451 = vmatpush3.bf16.msra.mxu1 %v494_v30 }
  0x34   :  { %423 = vmatprep.subr.bf16.mxu0 %v482_v8  ;;  %452 = vmatprep.subr.bf16.mxu1 %v593_v20 }
  0x37   :  { %424 = vmatpush3.bf16.msra.mxu0 %v483_v9  ;;  %453 = vmatpush3.bf16.msra.mxu1 %v495_v31 }
  0x38   :  { %425 = vmatprep.subr.bf16.mxu0 %v484_v10  ;;  %454 = vmatprep.subr.bf16.mxu1 %v593_v20 }
  0x3b   :  { %426 = vmatpush3.bf16.msra.mxu0 %v485_v12  ;;  %455 = vmatpush3.bf16.msra.mxu1 %v496_v32 }
  0x3c   :  { %427 = vmatprep.subr.bf16.mxu0 %v486_v14  ;;  %456 = vmatprep.subr.bf16.mxu1 %v593_v20 }
  0x3f   :  { %428 = vmatpush3.bf16.msra.mxu0 %v487_v15  ;;  %457 = vmatpush3.bf16.msra.mxu1 %v497_v33 }
  0x40   :  { %429 = vmatprep.subr.bf16.mxu0 %v488_v16  ;;  %458 = vmatprep.subr.bf16.mxu1 %v593_v20 }
  0x43   :  { %430 = vmatpush3.bf16.msra.mxu0 %v489_v17  ;;  %459 = vmatpush3.bf16.msra.mxu1 %v498_v34 }
  0x44   :  { %460 = vmatprep.subr.bf16.mxu1 %v593_v20 }
  0x46   :  { %237 = vmatmul.mubr.bf16.vlgmr.msra.gmra.mxu0 %v388_v18 }
  0x47   :  { %461 = vmatpush3.bf16.msra.mxu1 %v499_v35 }
 0x106   :  { %v431_v21 = vpop.f32.mrf.mxu0 }
 0x108   :  { %v432_v23 = vpop.f32.mrf.mxu0 }
 0x109   :  { %v433_v24 = vadd.f32 %v432_v23, %v431_v21 }
 0x10a   :  { %v434_v25 = vpop.f32.mrf.mxu0 }
 0x10b   :  { %v239_v26 = vadd.f32 %v433_v24, %v387_v22 }
 0x10c   :  { %v435_v27 = vpop.f32.mrf.mxu0 }
 0x10d   :  { %244 = vadd.xlane.f32.xlu0 %v239_v26  ;;  %v247_v28 = vmul.f32 %v239_v26, %v239_v26 }
 0x111   :  { %248 = vadd.xlane.f32.xlu0 %v247_v28 }
 0x196   :  { %v245_v36 = vpop.xlane.xlu0 %244 }
 0x197   :  { %v246_v37 = vmul.f32 0.03125, %v245_v36 }
 0x199   :  { %v251_v39 = vmul.f32 %v246_v37, %v246_v37  ;;  %v255_v43 = vsub.f32 %v239_v26, %v246_v37 }
 0x19a   :  { %v249_v38 = vpop.xlane.xlu0 %248 }
 0x19b   :  { %v250_v40 = vmul.f32 0.03125, %v249_v38 }
 0x19d   :  { %v252_v41 = vsub.f32 %v250_v40, %v251_v39 }
 0x19f   :  { %v253_v42 = vadd.f32 1e-05, %v252_v41 }
 0x1a1   :  { %500 = vrsqrt.f32 %v253_v42 }
 0x1ae   :  { %v501_v44 = vpop.eup %500 }
 0x1af   :  { %v256_v45 = vmul.f32 %v501_v44, %v255_v43 }
 0x1b1   :  { %v257_v46 = vpack.c.bf16 %v256_v45, %v256_v45 }
 0x1b3   :  { %463 = vmatmul.mubr.bf16.vlgmr.msra.gmra.mxu1 %v257_v46 }
 0x273   :  { %v363_v48 = vpop.f32.mrf.mxu1 }
 0x274   :  { %v364_v49 = vadd.f32 %v406_v47, %v363_v48 }
 0x275   :  { %v464_v50 = vpop.f32.mrf.mxu1 }
 0x276   :  { %v369_v51 = vpack.c.bf16 %v364_v49, %v364_v49 }
 0x277   :  { %v366_v52 = vpop.f32.mrf.mxu1 }
 0x278   :  { %370 = vst [vmem:[#allocation8] sm:$0xf] %v369_v51 }
 0x279   :  { %v465_v53 = vpop.f32.mrf.mxu1 }
 0x27a   :  { %573 = shalt.err (!%p570_p5)
}
 0x27b   :  { %380 = dma.vmem_to_hbm [thread:$0]  %s378_s11, 64, %s649_s5, [#allocation4]  }
 0x27c   :  { %586 = dma.done.wait [#allocation4], 64  }
 0x27d   :  { %587 = vsyncadd [#allocation4], 4294967232 }
 0x27e   :  { %384 = vsyncpa [#allocation3], 1 }
 0x27f   :  { %385 = vsyncpa [#allocation6], 1 }
 0x280   :  { %386 = vsyncpa [#allocation4], 1 }

// kernel: tpu_custom_call.1
= control target key start
LH: loop header
LB: loop body
LE: loop exit
PB: predicated region body
PF: predicated region fallthrough
CT: control target
= control target key end

     0   :  { %10 = vsyncpa [#allocation3], 0  ;;  %s644_s0 = inlined_call_operand.hbm [shape: bf16[8,256], index: 0, kind: input, shape index: {}]   ;;  %s645_s1 = inlined_call_operand.hbm [shape: bf16[256,128], index: 1, kind: input, shape index: {}]   ;;  %s646_s2 = inlined_call_operand.vmem [shape: f32[1,128], index: 2, kind: input, shape index: {}]   ;;  %s647_s3 = inlined_call_operand.hbm [shape: bf16[128,128], index: 3, kind: input, shape index: {}]   ;;  %s648_s4 = inlined_call_operand.vmem [shape: f32[1,128], index: 4, kind: input, shape index: {}]   ;;  %s649_s5 = inlined_call_operand.hbm [shape: bf16[8,128], index: 5, kind: output, shape index: {}]  }
   0x1   :  { %11 = vsyncpa [#allocation6], 0 }
   0x2   :  { %12 = vsyncpa [#allocation4], 0  ;;  %s588_s18 = smov [#allocation5]  }
   0x3   :  { %s28_s19 = sshll.u32 %s588_s18, 4  ;;  %s29_s19 = int_to_ptr.vmem [resolvable:$true] %s28_s19 }
   0x4   :  { %s510_s20 = scalar_lea.vmem %s29_s19, 2048  ;;  %p515_p1 = scmp.lt.s32.totalorder %s29_s19, %s29_s19 }
   0x5   :  { %p511_p0 = scmp.ne.s32.totalorder %s29_s19, %s510_s20  ;;  %p516_p2 = scmp.lt.s32.totalorder %s510_s20, %s510_s20 }
   0x7   :  { %p517_p3 = por %p516_p2, %p515_p1 }
   0x9   :  { %p518_p4 = pnand %p517_p3, %p511_p0 }
   0xb   :  { %521 = shalt.err (!%p518_p4)
}
   0xc   :  { %s589_s21 = smov 64   ;;  %s590_s22 = smov 4  }
   0xd   :  { %34 = dma.hbm_to_vmem [thread:$0]  %s645_s1, 2048, %s29_s19, [#allocation6], %s589_s21, %s589_s21, %s590_s22  }
   0xe   :  { %s591_s25 = smov [#allocation2]   ;;  %s592_s27 = smov [#allocation7]  }
   0xf   :  { %s19_s26 = sshll.u32 %s591_s25, 4  ;;  %s42_s28 = sshll.u32 %s592_s27, 4  ;;  %s20_s26 = int_to_ptr.vmem [resolvable:$true] %s19_s26  ;;  %s43_s28 = int_to_ptr.vmem [resolvable:$true] %s42_s28 }
  0x10   :  { %s530_s29 = scalar_lea.vmem %s20_s26, 128  ;;  %p535_p6 = scmp.lt.s32.totalorder %s20_s26, %s20_s26 }
  0x11   :  { %p531_p5 = scmp.ne.s32.totalorder %s20_s26, %s530_s29  ;;  %p536_p7 = scmp.lt.s32.totalorder %s530_s29, %s530_s29 }
  0x13   :  { %p537_p8 = por %p536_p7, %p535_p6 }
  0x15   :  { %p538_p9 = pnand %p537_p8, %p531_p5 }
  0x17   :  { %541 = shalt.err (!%p538_p9)
}
  0x18   :  { %22 = dma.hbm_to_vmem [thread:$0]  %s644_s0, 128, %s20_s26, [#allocation3]  }
  0x19   :  { %s550_s7 = scalar_lea.vmem %s43_s28, 1024  ;;  %p555_p11 = scmp.lt.s32.totalorder %s43_s28, %s43_s28 }
  0x1a   :  { %p551_p10 = scmp.ne.s32.totalorder %s43_s28, %s550_s7  ;;  %p556_p12 = scmp.lt.s32.totalorder %s550_s7, %s550_s7 }
  0x1c   :  { %p557_p13 = por %p556_p12, %p555_p11 }
  0x1e   :  { %p558_p0 = pnand %p557_p13, %p551_p10 }
  0x20   :  { %561 = shalt.err (!%p558_p0)
}
  0x21   :  { %48 = dma.hbm_to_vmem [thread:$0]  %s647_s3, 1024, %s43_s28, [#allocation6], %s589_s21, %s589_s21, %s590_s22  }
  0x22   :  { %582 = dma.done.wait [#allocation3], 128  }
  0x23   :  { %583 = vsyncadd [#allocation3], 4294967168 }
  0x24   :  { %584 = dma.done.wait [#allocation6], 3072  }
  0x25   :  { %585 = vsyncadd [#allocation6], 4294964224  ;;  %v474_v0 = vld [vmem:[#allocation5 + $0x78] sm:$0xff]   ;;  %v476_v2 = vld [vmem:[#allocation5 + $0x70] sm:$0xff]   ;;  %v593_v20 = vmov 0.0   ;;  %vm594_vm0 = vmmov 0  }
  0x26   :  { %v475_v1 = vld [vmem:[#allocation5 + $0x38] sm:$0xff]   ;;  %415 = vmatprep.subr.bf16.mxu0 %v474_v0  ;;  %v477_v3 = vld [vmem:[#allocation5 + $0x30] sm:$0xff]   ;;  %v478_v4 = vld [vmem:[#allocation5 + $0x68] sm:$0xff]   ;;  %446 = vmatprep.subr.bf16.mxu1 %v593_v20  ;;  %s595_s10 = smov [#allocation8]  }
  0x27   :  { %416 = vmatpush3.bf16.msra.mxu0 %v475_v1  ;;  %v479_v5 = vld [vmem:[#allocation5 + $0x28] sm:$0xff]   ;;  %v480_v6 = vld [vmem:[#allocation5 + $0x60] sm:$0xff]   ;;  %v482_v8 = vld [vmem:[#allocation5 + $0x58] sm:$0xff]   ;;  %462 = vmatprep.mubr.msk.bf16.mxu1 %vm594_vm0, %v593_v20  ;;  %s377_s11 = sshll.u32 %s595_s10, 4  ;;  %s378_s11 = int_to_ptr.vmem [resolvable:$true] %s377_s11 }
  0x28   :  { %417 = vmatprep.subr.bf16.mxu0 %v476_v2  ;;  %v481_v7 = vld [vmem:[#allocation5 + $0x20] sm:$0xff]   ;;  %v483_v9 = vld [vmem:[#allocation5 + $0x18] sm:$0xff]   ;;  %v484_v10 = vld [vmem:[#allocation5 + $0x50] sm:$0xff]   ;;  %s562_s12 = scalar_lea.vmem %s378_s11, 64  ;;  %p567_p2 = scmp.lt.s32.totalorder %s378_s11, %s378_s11 }
  0x29   :  { %v61_v11 = vld [vmem:[#allocation2] sm:$0xff]  ;;  %v485_v12 = vld [vmem:[#allocation5 + $0x10] sm:$0xff]   ;;  %v486_v14 = vld [vmem:[#allocation5 + $0x48] sm:$0xff]   ;;  %p563_p1 = scmp.ne.s32.totalorder %s378_s11, %s562_s12  ;;  %p568_p3 = scmp.lt.s32.totalorder %s562_s12, %s562_s12 }
  0x2a   :  { %v389_v13 = vcombine.high %v61_v11, %v61_v11  ;;  %v487_v15 = vld [vmem:[#allocation5 + $0x8] sm:$0xff]   ;;  %v488_v16 = vld [vmem:[#allocation5 + $0x40] sm:$0xff]   ;;  %v388_v18 = vcombine.low %v61_v11, %v61_v11  ;;  %v492_v19 = vld [vmem:[#allocation7 + $0x38] sm:$0xff]  }
  0x2b   :  { %418 = vmatpush3.bf16.msra.mxu0 %v477_v3  ;;  %v489_v17 = vld [vmem:[#allocation5] sm:$0xff]   ;;  %447 = vmatpush3.bf16.msra.mxu1 %v492_v19  ;;  %v387_v22 = vld [vmem:[%s646_s2] ss:$0 sm:$0xff]  ;;  %v493_v29 = vld [vmem:[#allocation7 + $0x30] sm:$0xff]   ;;  %p569_p4 = por %p568_p3, %p567_p2 }
  0x2c   :  { %419 = vmatprep.subr.bf16.mxu0 %v478_v4  ;;  %236 = vmatprep.mubr.bf16.mxu0 %v389_v13  ;;  %v494_v30 = vld [vmem:[#allocation7 + $0x28] sm:$0xff]   ;;  %v495_v31 = vld [vmem:[#allocation7 + $0x20] sm:$0xff]   ;;  %v496_v32 = vld [vmem:[#allocation7 + $0x18] sm:$0xff]  }
  0x2d   :  { %448 = vmatprep.subr.bf16.mxu1 %v593_v20  ;;  %v497_v33 = vld [vmem:[#allocation7 + $0x10] sm:$0xff]   ;;  %v498_v34 = vld [vmem:[#allocation7 + $0x8] sm:$0xff]   ;;  %v499_v35 = vld [vmem:[#allocation7] sm:$0xff]   ;;  %p570_p5 = pnand %p569_p4, %p563_p1 }
  0x2e   :  { %v406_v47 = vld [vmem:[%s648_s4] ss:$0 sm:$0xff] }
  0x2f   :  { %420 = vmatpush3.bf16.msra.mxu0 %v479_v5  ;;  %449 = vmatpush3.bf16.msra.mxu1 %v493_v29 }
  0x30   :  { %421 = vmatprep.subr.bf16.mxu0 %v480_v6  ;;  %450 = vmatprep.subr.bf16.mxu1 %v593_v20 }
  0x33   :  { %422 = vmatpush3.bf16.msra.mxu0 %v481_v7  ;;  %451 = vmatpush3.bf16.msra.mxu1 %v494_v30 }
  0x34   :  { %423 = vmatprep.subr.bf16.mxu0 %v482_v8  ;;  %452 = vmatprep.subr.bf16.mxu1 %v593_v20 }
  0x37   :  { %424 = vmatpush3.bf16.msra.mxu0 %v483_v9  ;;  %453 = vmatpush3.bf16.msra.mxu1 %v495_v31 }
  0x38   :  { %425 = vmatprep.subr.bf16.mxu0 %v484_v10  ;;  %454 = vmatprep.subr.bf16.mxu1 %v593_v20 }
  0x3b   :  { %426 = vmatpush3.bf16.msra.mxu0 %v485_v12  ;;  %455 = vmatpush3.bf16.msra.mxu1 %v496_v32 }
  0x3c   :  { %427 = vmatprep.subr.bf16.mxu0 %v486_v14  ;;  %456 = vmatprep.subr.bf16.mxu1 %v593_v20 }
  0x3f   :  { %428 = vmatpush3.bf16.msra.mxu0 %v487_v15  ;;  %457 = vmatpush3.bf16.msra.mxu1 %v497_v33 }
  0x40   :  { %429 = vmatprep.subr.bf16.mxu0 %v488_v16  ;;  %458 = vmatprep.subr.bf16.mxu1 %v593_v20 }
  0x43   :  { %430 = vmatpush3.bf16.msra.mxu0 %v489_v17  ;;  %459 = vmatpush3.bf16.msra.mxu1 %v498_v34 }
  0x44   :  { %460 = vmatprep.subr.bf16.mxu1 %v593_v20 }
  0x46   :  { %237 = vmatmul.mubr.bf16.vlgmr.msra.gmra.mxu0 %v388_v18 }
  0x47   :  { %461 = vmatpush3.bf16.msra.mxu1 %v499_v35 }
 0x106   :  { %v431_v21 = vpop.f32.mrf.mxu0 }
 0x108   :  { %v432_v23 = vpop.f32.mrf.mxu0 }
 0x109   :  { %v433_v24 = vadd.f32 %v432_v23, %v431_v21 }
 0x10a   :  { %v434_v25 = vpop.f32.mrf.mxu0 }
 0x10b   :  { %v239_v26 = vadd.f32 %v433_v24, %v387_v22 }
 0x10c   :  { %v435_v27 = vpop.f32.mrf.mxu0 }
 0x10d   :  { %244 = vadd.xlane.f32.xlu0 %v239_v26  ;;  %v247_v28 = vmul.f32 %v239_v26, %v239_v26 }
 0x111   :  { %248 = vadd.xlane.f32.xlu0 %v247_v28 }
 0x196   :  { %v245_v36 = vpop.xlane.xlu0 %244 }
 0x197   :  { %v246_v37 = vmul.f32 0.03125, %v245_v36 }
 0x199   :  { %v251_v39 = vmul.f32 %v246_v37, %v246_v37  ;;  %v255_v43 = vsub.f32 %v239_v26, %v246_v37 }
 0x19a   :  { %v249_v38 = vpop.xlane.xlu0 %248 }
 0x19b   :  { %v250_v40 = vmul.f32 0.03125, %v249_v38 }
 0x19d   :  { %v252_v41 = vsub.f32 %v250_v40, %v251_v39 }
 0x19f   :  { %v253_v42 = vadd.f32 1e-05, %v252_v41 }
 0x1a1   :  { %500 = vrsqrt.f32 %v253_v42 }
 0x1ae   :  { %v501_v44 = vpop.eup %500 }
 0x1af   :  { %v256_v45 = vmul.f32 %v501_v44, %v255_v43 }
 0x1b1   :  { %v257_v46 = vpack.c.bf16 %v256_v45, %v256_v45 }
 0x1b3   :  { %463 = vmatmul.mubr.bf16.vlgmr.msra.gmra.mxu1 %v257_v46 }
 0x273   :  { %v363_v48 = vpop.f32.mrf.mxu1 }
 0x274   :  { %v364_v49 = vadd.f32 %v406_v47, %v363_v48 }
 0x275   :  { %v464_v50 = vpop.f32.mrf.mxu1 }
 0x276   :  { %v369_v51 = vpack.c.bf16 %v364_v49, %v364_v49 }
 0x277   :  { %v366_v52 = vpop.f32.mrf.mxu1 }
 0x278   :  { %370 = vst [vmem:[#allocation8] sm:$0xf] %v369_v51 }
 0x279   :  { %v465_v53 = vpop.f32.mrf.mxu1 }
 0x27a   :  { %573 = shalt.err (!%p570_p5)
}
 0x27b   :  { %380 = dma.vmem_to_hbm [thread:$0]  %s378_s11, 64, %s649_s5, [#allocation4]  }
 0x27c   :  { %586 = dma.done.wait [#allocation4], 64  }
 0x27d   :  { %587 = vsyncadd [#allocation4], 4294967232 }
 0x27e   :  { %384 = vsyncpa [#allocation3], 1 }
 0x27f   :  { %385 = vsyncpa [#allocation6], 1 }
 0x280   :  { %386 = vsyncpa [#allocation4], 1 }

</bundles_post_ra>
